<compile_context>
chip_gen: v6e
topology: v6e:2x2x1
jax: 0.10.0
libtpu: 0.0.40
codegen_flags: <defaults>
</compile_context>

<pallas_src>
import jax
import jax.numpy as jnp
from jax.experimental import pallas as pl
from jax.experimental.pallas import tpu as pltpu

SQRT_HALF = 0.7071067811865476   # sqrt(1/2)
SQRT_TWO = 1.4142135623730951    # 1 / sqrt(1/2)

# indices inside the stacked weight tensors
DEC_N, DEC_F, SD_F = 0, 1, 2


# ---------------------------------------------------------------------------
# Fused kernel: one grid step == one batch sample, data layout (C, H*W).
# ---------------------------------------------------------------------------
def _inv_rms(x):
    """1 / sqrt(mean(x^2)) over all elements of a 2-D tile -> shape (1, 1)."""
    ss = jnp.sum(x * x, axis=-1, keepdims=True)        # lane reduce    -> (rows, 1)
    ss = jnp.sum(ss, axis=0, keepdims=True)            # sublane reduce -> (1, 1)
    return jax.lax.rsqrt(ss * (1.0 / float(x.shape[0] * x.shape[1])))


def _mlp(k, x, w1_ref, b1_ref, w2_ref, b2_ref):
    """Per-pixel 1x1-conv MLP with the pixel dim on lanes.

    x: (C, HW);  w1[k]: (Hd, C);  w2[k]: (Cout, Hd);  out: (Cout, HW).
    """
    h = jnp.dot(w1_ref[k], x, preferred_element_type=jnp.float32) + b1_ref[k]
    h = jnp.maximum(h, 0.0)
    return jnp.dot(w2_ref[k], h, preferred_element_type=jnp.float32) + b2_ref[k]


def _fused_kernel(csi_n_ref, csi_f_ref,                 # SMEM (B,) scalars
                  x_n_ref, x_f_ref,                     # (1, C, HW) VMEM tiles
                  noise_ref,                            # (1, 2, C, HW) pre-scaled AWGN
                  w1_ref, b1_ref, w2_ref, b2_ref,       # stacked MLP weights
                  s_n_ref, s_f_ref, xfh_ref):           # (1, C, HW) outputs
    b = pl.program_id(0)
    x_n = x_n_ref[0]                                    # (C, HW)
    x_f = x_f_ref[0]

    # per-sample power norm + equal-power superposition coding
    sc = SQRT_HALF * (x_n * _inv_rms(x_n) + x_f * _inv_rms(x_f))

    # flat-fading AWGN channel for near / far users (noise already scaled)
    y_n = csi_n_ref[b] * sc + noise_ref[0, 0]
    y_f = csi_f_ref[b] * sc + noise_ref[0, 1]

    # far user decodes its own signal directly
    s_f_hat = _mlp(DEC_F, y_f, w1_ref, b1_ref, w2_ref, b2_ref)

    # near user: detect far-user signal, SIC-subtract its power-normalised
    # version, then decode its own signal.
    #   residual = (y_n - sqrt(1/2)*pn(x_f_hat)) / sqrt(1/2)
    #            = sqrt(2)*y_n - x_f_hat * inv_rms(x_f_hat)
    x_f_hat = _mlp(SD_F, y_n, w1_ref, b1_ref, w2_ref, b2_ref)
    residual = SQRT_TWO * y_n - x_f_hat * _inv_rms(x_f_hat)
    s_n_hat = _mlp(DEC_N, residual, w1_ref, b1_ref, w2_ref, b2_ref)

    s_n_ref[0] = s_n_hat
    s_f_ref[0] = s_f_hat
    xfh_ref[0] = x_f_hat


# ---------------------------------------------------------------------------
# Wrapper: single pallas_call, grid over the batch dimension.
# ---------------------------------------------------------------------------
def eq_pow_sccoding_sic_decoding_fwd(params, x_n, x_f, csi_n, csi_f, seed,
                                     noise_std=0.1):
    w1, b1, w2, b2 = params                    # (3,Hd,C) (3,Hd,1) (3,C,Hd) (3,C,1)
    B, C, H, W = x_n.shape
    HW = H * W

    xn = x_n.reshape(B, C, HW).astype(jnp.float32)   # pure reshape, no transpose
    xf = x_f.reshape(B, C, HW).astype(jnp.float32)
    csi_n = csi_n.astype(jnp.float32)
    csi_f = csi_f.astype(jnp.float32)

    # AWGN for both users, pre-scaled by noise_std (generated host-side so the
    # kernel stays portable; streamed per-sample through the pipeline).
    noise = jnp.float32(noise_std) * jax.random.normal(
        jax.random.PRNGKey(seed), (B, 2, C, HW), jnp.float32)

    smem_spec = pl.BlockSpec(memory_space=pltpu.MemorySpace.SMEM)
    x_spec = pl.BlockSpec((1, C, HW), lambda b: (b, 0, 0))
    noise_spec = pl.BlockSpec((1, 2, C, HW), lambda b: (b, 0, 0, 0))

    def w_spec(shape):
        return pl.BlockSpec(shape, lambda b: (0, 0, 0))

    s_n, s_f, xfh = pl.pallas_call(
        _fused_kernel,
        grid=(B,),
        in_specs=[smem_spec, smem_spec,
                  x_spec, x_spec, noise_spec,
                  w_spec(w1.shape), w_spec(b1.shape),
                  w_spec(w2.shape), w_spec(b2.shape)],
        out_specs=(x_spec, x_spec, x_spec),
        out_shape=(jax.ShapeDtypeStruct((B, C, HW), jnp.float32),) * 3,
        compiler_params=pltpu.CompilerParams(
            dimension_semantics=("parallel",)),
    )(csi_n, csi_f, xn, xf, noise, w1, b1, w2, b2)

    channel_use = jnp.int32(C * HW)
    return (s_n.reshape(B, C, H, W),
            s_f.reshape(B, C, H, W),
            xfh.reshape(B, C, H, W),
            channel_use, channel_use)


# ---------------------------------------------------------------------------
# Parameter init (conv-style weight layout: (out, in)).
# ---------------------------------------------------------------------------
def init_params(key, C, hidden):
    ks = jax.random.split(key, 6)

    def mk(kw1, kw2):
        w1 = 0.1 * jax.random.normal(kw1, (hidden, C), jnp.float32)
        b1 = jnp.zeros((hidden, 1), jnp.float32)
        w2 = 0.1 * jax.random.normal(kw2, (C, hidden), jnp.float32)
        b2 = jnp.zeros((C, 1), jnp.float32)
        return w1, b1, w2, b2

    dec_n = mk(ks[0], ks[1])
    dec_f = mk(ks[2], ks[3])
    sd_f = mk(ks[4], ks[5])
    stacks = tuple(jnp.stack([dec_n[i], dec_f[i], sd_f[i]]) for i in range(4))
    return stacks                              # order: [decoder_n, decoder_f, sd_net_f]


# ---------------------------------------------------------------------------
# Pure-JAX reference (noiseless) for a correctness check.
# ---------------------------------------------------------------------------
def _reference_fwd(params, x_n, x_f, csi_n, csi_f):
    w1, b1, w2, b2 = params
    B, C, H, W = x_n.shape
    HW = H * W

    def pn(x):
        return x * jax.lax.rsqrt(jnp.mean(x * x, axis=(1, 2, 3), keepdims=True))

    def mlp(k, x):                             # x: (B, C, HW)
        h = jnp.maximum(jnp.einsum('hc,bcp->bhp', w1[k], x) + b1[k][None], 0.0)
        return jnp.einsum('ch,bhp->bcp', w2[k], h) + b2[k][None]

    sc = SQRT_HALF * (pn(x_n) + pn(x_f))
    y_n = (csi_n[:, None, None, None] * sc).reshape(B, C, HW)
    y_f = (csi_f[:, None, None, None] * sc).reshape(B, C, HW)

    s_f_hat = mlp(DEC_F, y_f)
    x_f_hat = mlp(SD_F, y_n)
    x_f_norm = x_f_hat * jax.lax.rsqrt(
        jnp.mean(x_f_hat * x_f_hat, axis=(1, 2), keepdims=True))
    residual = (y_n - SQRT_HALF * x_f_norm) / SQRT_HALF
    s_n_hat = mlp(DEC_N, residual)
    return (s_n_hat.reshape(B, C, H, W), s_f_hat.reshape(B, C, H, W),
            x_f_hat.reshape(B, C, H, W))


if __name__ == "__main__":
    B, C, H, W = 2, 4, 16, 16
    HIDDEN = 32

    key = jax.random.PRNGKey(0)
    k1, k2, k3, k4, kp = jax.random.split(key, 5)
    x_n = jax.random.normal(k1, (B, C, H, W), jnp.float32)
    x_f = jax.random.normal(k2, (B, C, H, W), jnp.float32)
    csi_n = jax.random.uniform(k3, (B,), jnp.float32, 0.5, 1.5)
    csi_f = jax.random.uniform(k4, (B,), jnp.float32, 0.5, 1.5)
    params = init_params(kp, C, HIDDEN)

    # Noiseless pass is fully deterministic -> verify against pure-JAX reference.
    outs0 = eq_pow_sccoding_sic_decoding_fwd(params, x_n, x_f, csi_n, csi_f,
                                             seed=7, noise_std=0.0)
    jax.block_until_ready(outs0)
    ref = _reference_fwd(params, x_n, x_f, csi_n, csi_f)
    for got, want in zip(outs0[:3], ref):
        assert got.shape == want.shape
        err = float(jnp.max(jnp.abs(got - want)))
        assert err < 1e-2, f"mismatch vs reference: {err}"

    # Real pass with AWGN.
    outs = eq_pow_sccoding_sic_decoding_fwd(params, x_n, x_f, csi_n, csi_f,
                                            seed=7, noise_std=0.1)
    jax.block_until_ready(outs)
    s_n_hat, s_f_hat, x_f_hat_n, cu_n, cu_f = outs
    assert s_n_hat.shape == (B, C, H, W)
    assert s_f_hat.shape == (B, C, H, W)
    assert x_f_hat_n.shape == (B, C, H, W)
    print("KERNEL_OK")
</pallas_src>

<mosaic_0001>
module attributes {stable_mosaic.version = 11 : i64} {
  func.func @_fused_kernel(%arg0: i32, %arg1: memref<2xf32, #tpu.memory_space<smem>>, %arg2: memref<2xf32, #tpu.memory_space<smem>>, %arg3: memref<1x4x256xf32, #tpu.memory_space<vmem>>, %arg4: memref<1x4x256xf32, #tpu.memory_space<vmem>>, %arg5: memref<1x2x4x256xf32, #tpu.memory_space<vmem>>, %arg6: memref<3x32x4xf32, #tpu.memory_space<vmem>>, %arg7: memref<3x32x1xf32, #tpu.memory_space<vmem>>, %arg8: memref<3x4x32xf32, #tpu.memory_space<vmem>>, %arg9: memref<3x4x1xf32, #tpu.memory_space<vmem>>, %arg10: memref<1x4x256xf32, #tpu.memory_space<vmem>>, %arg11: memref<1x4x256xf32, #tpu.memory_space<vmem>>, %arg12: memref<1x4x256xf32, #tpu.memory_space<vmem>>) attributes {dimension_semantics = [#tpu.dimension_semantics<parallel>], iteration_bounds = array<i64: 2>, scalar_prefetch = 0 : i64, scratch_operands = 0 : i64, tpu.core_type = #tpu.core_type<tc>, window_params = [{transform_indices = @transform_0, window_bounds = array<i64: 2>}, {transform_indices = @transform_1, window_bounds = array<i64: 2>}, {transform_indices = @transform_2, window_bounds = array<i64: 1, 4, 256>}, {transform_indices = @transform_3, window_bounds = array<i64: 1, 4, 256>}, {transform_indices = @transform_4, window_bounds = array<i64: 1, 2, 4, 256>}, {pipeline_mode = #tpu.pipeline_mode<synchronous>, transform_indices = @transform_5, window_bounds = array<i64: 3, 32, 4>}, {pipeline_mode = #tpu.pipeline_mode<synchronous>, transform_indices = @transform_6, window_bounds = array<i64: 3, 32, 1>}, {pipeline_mode = #tpu.pipeline_mode<synchronous>, transform_indices = @transform_7, window_bounds = array<i64: 3, 4, 32>}, {pipeline_mode = #tpu.pipeline_mode<synchronous>, transform_indices = @transform_8, window_bounds = array<i64: 3, 4, 1>}, {transform_indices = @transform_9, window_bounds = array<i64: 1, 4, 256>}, {transform_indices = @transform_10, window_bounds = array<i64: 1, 4, 256>}, {transform_indices = @transform_11, window_bounds = array<i64: 1, 4, 256>}]} {
    %c0 = arith.constant 0 : index
    %c0_0 = arith.constant 0 : index
    %c0_1 = arith.constant 0 : index
    %0 = vector.load %arg3[%c0, %c0_0, %c0_1] : memref<1x4x256xf32, #tpu.memory_space<vmem>>, vector<1x4x256xf32>
    %1 = vector.shape_cast %0 : vector<1x4x256xf32> to vector<4x256xf32>
    %c0_2 = arith.constant 0 : index
    %c0_3 = arith.constant 0 : index
    %c0_4 = arith.constant 0 : index
    %2 = vector.load %arg4[%c0_2, %c0_3, %c0_4] : memref<1x4x256xf32, #tpu.memory_space<vmem>>, vector<1x4x256xf32>
    %3 = vector.shape_cast %2 : vector<1x4x256xf32> to vector<4x256xf32>
    %4 = arith.mulf %1, %1 : vector<4x256xf32>
    %cst = arith.constant dense<0.000000e+00> : vector<4xf32>
    %5 = vector.multi_reduction <add>, %4, %cst [1] : vector<4x256xf32> to vector<4xf32>
    %6 = vector.shape_cast %5 : vector<4xf32> to vector<4x1xf32>
    %cst_5 = arith.constant dense<0.000000e+00> : vector<1xf32>
    %7 = vector.multi_reduction <add>, %6, %cst_5 [0] : vector<4x1xf32> to vector<1xf32>
    %8 = vector.shape_cast %7 : vector<1xf32> to vector<1x1xf32>
    %cst_6 = arith.constant 9.765625E-4 : f32
    %9 = vector.broadcast %cst_6 : f32 to vector<1x1xf32>
    %10 = arith.mulf %8, %9 : vector<1x1xf32>
    %11 = math.rsqrt %10 : vector<1x1xf32>
    %12 = vector.broadcast %11 : vector<1x1xf32> to vector<4x256xf32>
    %13 = arith.mulf %1, %12 : vector<4x256xf32>
    %14 = arith.mulf %3, %3 : vector<4x256xf32>
    %cst_7 = arith.constant dense<0.000000e+00> : vector<4xf32>
    %15 = vector.multi_reduction <add>, %14, %cst_7 [1] : vector<4x256xf32> to vector<4xf32>
    %16 = vector.shape_cast %15 : vector<4xf32> to vector<4x1xf32>
    %cst_8 = arith.constant dense<0.000000e+00> : vector<1xf32>
    %17 = vector.multi_reduction <add>, %16, %cst_8 [0] : vector<4x1xf32> to vector<1xf32>
    %18 = vector.shape_cast %17 : vector<1xf32> to vector<1x1xf32>
    %cst_9 = arith.constant 9.765625E-4 : f32
    %19 = vector.broadcast %cst_9 : f32 to vector<1x1xf32>
    %20 = arith.mulf %18, %19 : vector<1x1xf32>
    %21 = math.rsqrt %20 : vector<1x1xf32>
    %22 = vector.broadcast %21 : vector<1x1xf32> to vector<4x256xf32>
    %23 = arith.mulf %3, %22 : vector<4x256xf32>
    %24 = arith.addf %13, %23 : vector<4x256xf32>
    %cst_10 = arith.constant 0.707106769 : f32
    %25 = vector.broadcast %cst_10 : f32 to vector<4x256xf32>
    %26 = arith.mulf %25, %24 : vector<4x256xf32>
    %27 = arith.index_cast %arg0 : i32 to index
    %28 = memref.load %arg1[%27] : memref<2xf32, #tpu.memory_space<smem>>
    %29 = vector.broadcast %28 : f32 to vector<4x256xf32>
    %30 = arith.mulf %29, %26 : vector<4x256xf32>
    %c0_11 = arith.constant 0 : index
    %c0_12 = arith.constant 0 : index
    %c0_13 = arith.constant 0 : index
    %c0_14 = arith.constant 0 : index
    %31 = vector.load %arg5[%c0_11, %c0_12, %c0_13, %c0_14] : memref<1x2x4x256xf32, #tpu.memory_space<vmem>>, vector<1x1x4x256xf32>
    %32 = vector.shape_cast %31 : vector<1x1x4x256xf32> to vector<4x256xf32>
    %33 = arith.addf %30, %32 : vector<4x256xf32>
    %34 = arith.index_cast %arg0 : i32 to index
    %35 = memref.load %arg2[%34] : memref<2xf32, #tpu.memory_space<smem>>
    %36 = vector.broadcast %35 : f32 to vector<4x256xf32>
    %37 = arith.mulf %36, %26 : vector<4x256xf32>
    %c0_15 = arith.constant 0 : index
    %c1 = arith.constant 1 : index
    %c0_16 = arith.constant 0 : index
    %c0_17 = arith.constant 0 : index
    %38 = vector.load %arg5[%c0_15, %c1, %c0_16, %c0_17] : memref<1x2x4x256xf32, #tpu.memory_space<vmem>>, vector<1x1x4x256xf32>
    %39 = vector.shape_cast %38 : vector<1x1x4x256xf32> to vector<4x256xf32>
    %40 = arith.addf %37, %39 : vector<4x256xf32>
    %c1_18 = arith.constant 1 : index
    %c0_19 = arith.constant 0 : index
    %c0_20 = arith.constant 0 : index
    %41 = vector.load %arg6[%c1_18, %c0_19, %c0_20] : memref<3x32x4xf32, #tpu.memory_space<vmem>>, vector<1x32x4xf32>
    %42 = vector.shape_cast %41 : vector<1x32x4xf32> to vector<32x4xf32>
    %cst_21 = arith.constant dense<0.000000e+00> : vector<32x256xf32>
    %43 = tpu.matmul %42, %40, %cst_21 {dimension_numbers = #tpu.dot_dimension_numbers<[1], [0], [0], [1], [0, 0, 1, 1], [], []>} : vector<32x4xf32>, vector<4x256xf32>, vector<32x256xf32> -> vector<32x256xf32>
    %c1_22 = arith.constant 1 : index
    %c0_23 = arith.constant 0 : index
    %c0_24 = arith.constant 0 : index
    %44 = vector.load %arg7[%c1_22, %c0_23, %c0_24] : memref<3x32x1xf32, #tpu.memory_space<vmem>>, vector<1x32x1xf32>
    %45 = vector.shape_cast %44 : vector<1x32x1xf32> to vector<32x1xf32>
    %46 = vector.broadcast %45 : vector<32x1xf32> to vector<32x256xf32>
    %47 = arith.addf %43, %46 : vector<32x256xf32>
    %cst_25 = arith.constant 0.000000e+00 : f32
    %48 = vector.broadcast %cst_25 : f32 to vector<32x256xf32>
    %49 = arith.maximumf %47, %48 : vector<32x256xf32>
    %c1_26 = arith.constant 1 : index
    %c0_27 = arith.constant 0 : index
    %c0_28 = arith.constant 0 : index
    %50 = vector.load %arg8[%c1_26, %c0_27, %c0_28] : memref<3x4x32xf32, #tpu.memory_space<vmem>>, vector<1x4x32xf32>
    %51 = vector.shape_cast %50 : vector<1x4x32xf32> to vector<4x32xf32>
    %cst_29 = arith.constant dense<0.000000e+00> : vector<4x256xf32>
    %52 = tpu.matmul %51, %49, %cst_29 {dimension_numbers = #tpu.dot_dimension_numbers<[1], [0], [0], [1], [0, 0, 1, 1], [], []>} : vector<4x32xf32>, vector<32x256xf32>, vector<4x256xf32> -> vector<4x256xf32>
    %c1_30 = arith.constant 1 : index
    %c0_31 = arith.constant 0 : index
    %c0_32 = arith.constant 0 : index
    %53 = vector.load %arg9[%c1_30, %c0_31, %c0_32] : memref<3x4x1xf32, #tpu.memory_space<vmem>>, vector<1x4x1xf32>
    %54 = vector.shape_cast %53 : vector<1x4x1xf32> to vector<4x1xf32>
    %55 = vector.broadcast %54 : vector<4x1xf32> to vector<4x256xf32>
    %56 = arith.addf %52, %55 : vector<4x256xf32>
    %c2 = arith.constant 2 : index
    %c0_33 = arith.constant 0 : index
    %c0_34 = arith.constant 0 : index
    %57 = vector.load %arg6[%c2, %c0_33, %c0_34] : memref<3x32x4xf32, #tpu.memory_space<vmem>>, vector<1x32x4xf32>
    %58 = vector.shape_cast %57 : vector<1x32x4xf32> to vector<32x4xf32>
    %cst_35 = arith.constant dense<0.000000e+00> : vector<32x256xf32>
    %59 = tpu.matmul %58, %33, %cst_35 {dimension_numbers = #tpu.dot_dimension_numbers<[1], [0], [0], [1], [0, 0, 1, 1], [], []>} : vector<32x4xf32>, vector<4x256xf32>, vector<32x256xf32> -> vector<32x256xf32>
    %c2_36 = arith.constant 2 : index
    %c0_37 = arith.constant 0 : index
    %c0_38 = arith.constant 0 : index
    %60 = vector.load %arg7[%c2_36, %c0_37, %c0_38] : memref<3x32x1xf32, #tpu.memory_space<vmem>>, vector<1x32x1xf32>
    %61 = vector.shape_cast %60 : vector<1x32x1xf32> to vector<32x1xf32>
    %62 = vector.broadcast %61 : vector<32x1xf32> to vector<32x256xf32>
    %63 = arith.addf %59, %62 : vector<32x256xf32>
    %cst_39 = arith.constant 0.000000e+00 : f32
    %64 = vector.broadcast %cst_39 : f32 to vector<32x256xf32>
    %65 = arith.maximumf %63, %64 : vector<32x256xf32>
    %c2_40 = arith.constant 2 : index
    %c0_41 = arith.constant 0 : index
    %c0_42 = arith.constant 0 : index
    %66 = vector.load %arg8[%c2_40, %c0_41, %c0_42] : memref<3x4x32xf32, #tpu.memory_space<vmem>>, vector<1x4x32xf32>
    %67 = vector.shape_cast %66 : vector<1x4x32xf32> to vector<4x32xf32>
    %cst_43 = arith.constant dense<0.000000e+00> : vector<4x256xf32>
    %68 = tpu.matmul %67, %65, %cst_43 {dimension_numbers = #tpu.dot_dimension_numbers<[1], [0], [0], [1], [0, 0, 1, 1], [], []>} : vector<4x32xf32>, vector<32x256xf32>, vector<4x256xf32> -> vector<4x256xf32>
    %c2_44 = arith.constant 2 : index
    %c0_45 = arith.constant 0 : index
    %c0_46 = arith.constant 0 : index
    %69 = vector.load %arg9[%c2_44, %c0_45, %c0_46] : memref<3x4x1xf32, #tpu.memory_space<vmem>>, vector<1x4x1xf32>
    %70 = vector.shape_cast %69 : vector<1x4x1xf32> to vector<4x1xf32>
    %71 = vector.broadcast %70 : vector<4x1xf32> to vector<4x256xf32>
    %72 = arith.addf %68, %71 : vector<4x256xf32>
    %cst_47 = arith.constant 1.41421354 : f32
    %73 = vector.broadcast %cst_47 : f32 to vector<4x256xf32>
    %74 = arith.mulf %73, %33 : vector<4x256xf32>
    %75 = arith.mulf %72, %72 : vector<4x256xf32>
    %cst_48 = arith.constant dense<0.000000e+00> : vector<4xf32>
    %76 = vector.multi_reduction <add>, %75, %cst_48 [1] : vector<4x256xf32> to vector<4xf32>
    %77 = vector.shape_cast %76 : vector<4xf32> to vector<4x1xf32>
    %cst_49 = arith.constant dense<0.000000e+00> : vector<1xf32>
    %78 = vector.multi_reduction <add>, %77, %cst_49 [0] : vector<4x1xf32> to vector<1xf32>
    %79 = vector.shape_cast %78 : vector<1xf32> to vector<1x1xf32>
    %cst_50 = arith.constant 9.765625E-4 : f32
    %80 = vector.broadcast %cst_50 : f32 to vector<1x1xf32>
    %81 = arith.mulf %79, %80 : vector<1x1xf32>
    %82 = math.rsqrt %81 : vector<1x1xf32>
    %83 = vector.broadcast %82 : vector<1x1xf32> to vector<4x256xf32>
    %84 = arith.mulf %72, %83 : vector<4x256xf32>
    %85 = arith.subf %74, %84 : vector<4x256xf32>
    %c0_51 = arith.constant 0 : index
    %c0_52 = arith.constant 0 : index
    %c0_53 = arith.constant 0 : index
    %86 = vector.load %arg6[%c0_51, %c0_52, %c0_53] : memref<3x32x4xf32, #tpu.memory_space<vmem>>, vector<1x32x4xf32>
    %87 = vector.shape_cast %86 : vector<1x32x4xf32> to vector<32x4xf32>
    %cst_54 = arith.constant dense<0.000000e+00> : vector<32x256xf32>
    %88 = tpu.matmul %87, %85, %cst_54 {dimension_numbers = #tpu.dot_dimension_numbers<[1], [0], [0], [1], [0, 0, 1, 1], [], []>} : vector<32x4xf32>, vector<4x256xf32>, vector<32x256xf32> -> vector<32x256xf32>
    %c0_55 = arith.constant 0 : index
    %c0_56 = arith.constant 0 : index
    %c0_57 = arith.constant 0 : index
    %89 = vector.load %arg7[%c0_55, %c0_56, %c0_57] : memref<3x32x1xf32, #tpu.memory_space<vmem>>, vector<1x32x1xf32>
    %90 = vector.shape_cast %89 : vector<1x32x1xf32> to vector<32x1xf32>
    %91 = vector.broadcast %90 : vector<32x1xf32> to vector<32x256xf32>
    %92 = arith.addf %88, %91 : vector<32x256xf32>
    %cst_58 = arith.constant 0.000000e+00 : f32
    %93 = vector.broadcast %cst_58 : f32 to vector<32x256xf32>
    %94 = arith.maximumf %92, %93 : vector<32x256xf32>
    %c0_59 = arith.constant 0 : index
    %c0_60 = arith.constant 0 : index
    %c0_61 = arith.constant 0 : index
    %95 = vector.load %arg8[%c0_59, %c0_60, %c0_61] : memref<3x4x32xf32, #tpu.memory_space<vmem>>, vector<1x4x32xf32>
    %96 = vector.shape_cast %95 : vector<1x4x32xf32> to vector<4x32xf32>
    %cst_62 = arith.constant dense<0.000000e+00> : vector<4x256xf32>
    %97 = tpu.matmul %96, %94, %cst_62 {dimension_numbers = #tpu.dot_dimension_numbers<[1], [0], [0], [1], [0, 0, 1, 1], [], []>} : vector<4x32xf32>, vector<32x256xf32>, vector<4x256xf32> -> vector<4x256xf32>
    %c0_63 = arith.constant 0 : index
    %c0_64 = arith.constant 0 : index
    %c0_65 = arith.constant 0 : index
    %98 = vector.load %arg9[%c0_63, %c0_64, %c0_65] : memref<3x4x1xf32, #tpu.memory_space<vmem>>, vector<1x4x1xf32>
    %99 = vector.shape_cast %98 : vector<1x4x1xf32> to vector<4x1xf32>
    %100 = vector.broadcast %99 : vector<4x1xf32> to vector<4x256xf32>
    %101 = arith.addf %97, %100 : vector<4x256xf32>
    %c0_66 = arith.constant 0 : index
    %c0_67 = arith.constant 0 : index
    %c0_68 = arith.constant 0 : index
    %102 = vector.load %arg10[%c0_66, %c0_67, %c0_68] : memref<1x4x256xf32, #tpu.memory_space<vmem>>, vector<1x4x256xf32>
    %103 = vector.shape_cast %102 : vector<1x4x256xf32> to vector<4x256xf32>
    %104 = vector.shape_cast %101 : vector<4x256xf32> to vector<1x4x256xf32>
    tpu.vector_store %arg10[%c0_66, %c0_67, %c0_68], %104 {strides = array<i32>} : memref<1x4x256xf32, #tpu.memory_space<vmem>>, vector<1x4x256xf32>,
    %c0_69 = arith.constant 0 : index
    %c0_70 = arith.constant 0 : index
    %c0_71 = arith.constant 0 : index
    %105 = vector.load %arg11[%c0_69, %c0_70, %c0_71] : memref<1x4x256xf32, #tpu.memory_space<vmem>>, vector<1x4x256xf32>
    %106 = vector.shape_cast %105 : vector<1x4x256xf32> to vector<4x256xf32>
    %107 = vector.shape_cast %56 : vector<4x256xf32> to vector<1x4x256xf32>
    tpu.vector_store %arg11[%c0_69, %c0_70, %c0_71], %107 {strides = array<i32>} : memref<1x4x256xf32, #tpu.memory_space<vmem>>, vector<1x4x256xf32>,
    %c0_72 = arith.constant 0 : index
    %c0_73 = arith.constant 0 : index
    %c0_74 = arith.constant 0 : index
    %108 = vector.load %arg12[%c0_72, %c0_73, %c0_74] : memref<1x4x256xf32, #tpu.memory_space<vmem>>, vector<1x4x256xf32>
    %109 = vector.shape_cast %108 : vector<1x4x256xf32> to vector<4x256xf32>
    %110 = vector.shape_cast %72 : vector<4x256xf32> to vector<1x4x256xf32>
    tpu.vector_store %arg12[%c0_72, %c0_73, %c0_74], %110 {strides = array<i32>} : memref<1x4x256xf32, #tpu.memory_space<vmem>>, vector<1x4x256xf32>,
    return
  }
  func.func @transform_0(%arg0: i32) -> i32 {
    %c0_i32 = arith.constant 0 : i32
    %c0_i32_0 = arith.constant 0 : i32
    return %c0_i32 : i32
  }
  func.func @transform_1(%arg0: i32) -> i32 {
    %c0_i32 = arith.constant 0 : i32
    %c0_i32_0 = arith.constant 0 : i32
    return %c0_i32 : i32
  }
  func.func @transform_2(%arg0: i32) -> (i32, i32, i32) {
    %c0_i32 = arith.constant 0 : i32
    %c0_i32_0 = arith.constant 0 : i32
    %c0_i32_1 = arith.constant 0 : i32
    return %arg0, %c0_i32, %c0_i32_0 : i32, i32, i32
  }
  func.func @transform_3(%arg0: i32) -> (i32, i32, i32) {
    %c0_i32 = arith.constant 0 : i32
    %c0_i32_0 = arith.constant 0 : i32
    %c0_i32_1 = arith.constant 0 : i32
    return %arg0, %c0_i32, %c0_i32_0 : i32, i32, i32
  }
  func.func @transform_4(%arg0: i32) -> (i32, i32, i32, i32) {
    %c0_i32 = arith.constant 0 : i32
    %c0_i32_0 = arith.constant 0 : i32
    %c0_i32_1 = arith.constant 0 : i32
    %c0_i32_2 = arith.constant 0 : i32
    return %arg0, %c0_i32, %c0_i32_0, %c0_i32_1 : i32, i32, i32, i32
  }
  func.func @transform_5(%arg0: i32) -> (i32, i32, i32) {
    %c0_i32 = arith.constant 0 : i32
    %c0_i32_0 = arith.constant 0 : i32
    %c0_i32_1 = arith.constant 0 : i32
    %c0_i32_2 = arith.constant 0 : i32
    return %c0_i32, %c0_i32_0, %c0_i32_1 : i32, i32, i32
  }
  func.func @transform_6(%arg0: i32) -> (i32, i32, i32) {
    %c0_i32 = arith.constant 0 : i32
    %c0_i32_0 = arith.constant 0 : i32
    %c0_i32_1 = arith.constant 0 : i32
    %c0_i32_2 = arith.constant 0 : i32
    return %c0_i32, %c0_i32_0, %c0_i32_1 : i32, i32, i32
  }
  func.func @transform_7(%arg0: i32) -> (i32, i32, i32) {
    %c0_i32 = arith.constant 0 : i32
    %c0_i32_0 = arith.constant 0 : i32
    %c0_i32_1 = arith.constant 0 : i32
    %c0_i32_2 = arith.constant 0 : i32
    return %c0_i32, %c0_i32_0, %c0_i32_1 : i32, i32, i32
  }
  func.func @transform_8(%arg0: i32) -> (i32, i32, i32) {
    %c0_i32 = arith.constant 0 : i32
    %c0_i32_0 = arith.constant 0 : i32
    %c0_i32_1 = arith.constant 0 : i32
    %c0_i32_2 = arith.constant 0 : i32
    return %c0_i32, %c0_i32_0, %c0_i32_1 : i32, i32, i32
  }
  func.func @transform_9(%arg0: i32) -> (i32, i32, i32) {
    %c0_i32 = arith.constant 0 : i32
    %c0_i32_0 = arith.constant 0 : i32
    %c0_i32_1 = arith.constant 0 : i32
    return %arg0, %c0_i32, %c0_i32_0 : i32, i32, i32
  }
  func.func @transform_10(%arg0: i32) -> (i32, i32, i32) {
    %c0_i32 = arith.constant 0 : i32
    %c0_i32_0 = arith.constant 0 : i32
    %c0_i32_1 = arith.constant 0 : i32
    return %arg0, %c0_i32, %c0_i32_0 : i32, i32, i32
  }
  func.func @transform_11(%arg0: i32) -> (i32, i32, i32) {
    %c0_i32 = arith.constant 0 : i32
    %c0_i32_0 = arith.constant 0 : i32
    %c0_i32_1 = arith.constant 0 : i32
    return %arg0, %c0_i32, %c0_i32_0 : i32, i32, i32
  }
}

</mosaic_0001>

<bundles_post_ra>
// kernel: tpu_custom_call.1
= control target key start
LH: loop header
LB: loop body
LE: loop exit
PB: predicated region body
PF: predicated region fallthrough
CT: control target
= control target key end

     0   :  { %s2209_s0 = inlined_call_operand.vmem [shape: f32[2], index: 0, kind: input, shape index: {}]   ;;  %s2210_s1 = inlined_call_operand.vmem [shape: f32[2], index: 1, kind: input, shape index: {}]   ;;  %s2211_s2 = inlined_call_operand.vmem [shape: f32[2,4,256], index: 2, kind: input, shape index: {}]   ;;  %s2212_s3 = inlined_call_operand.vmem [shape: f32[2,4,256], index: 3, kind: input, shape index: {}]   ;;  %s2213_s4 = inlined_call_operand.vmem [shape: f32[2,2,4,256], index: 4, kind: input, shape index: {}]   ;;  %s2214_s5 = inlined_call_operand.vmem [shape: f32[3,32,4], index: 5, kind: input, shape index: {}]   ;;  %s2215_s6 = inlined_call_operand.vmem [shape: f32[3,32,1], index: 6, kind: input, shape index: {}]   ;;  %s2216_s7 = inlined_call_operand.vmem [shape: f32[3,4,32], index: 7, kind: input, shape index: {}]   ;;  %s2217_s8 = inlined_call_operand.vmem [shape: f32[3,4,1], index: 8, kind: input, shape index: {}]   ;;  %s2218_s9 = inlined_call_operand.hbm [shape: f32[2,4,256], index: 9, kind: output, shape index: {0}]   ;;  %s2219_s10 = inlined_call_operand.hbm [shape: f32[2,4,256], index: 10, kind: output, shape index: {1}]   ;;  %s2220_s11 = inlined_call_operand.hbm [shape: f32[2,4,256], index: 11, kind: output, shape index: {2}]  }
   0x1   :  { %2227 = sst [smem:[#allocation15_spill]] %s2209_s0 }
   0x2   :  { %2228 = sst [smem:[#allocation16_spill]] %s2210_s1 }
   0x3   :  { %2229 = sst [smem:[#allocation17_spill]] %s2211_s2 }
   0x4   :  { %2230 = sst [smem:[#allocation18_spill]] %s2212_s3 }
   0x5   :  { %17 = vsyncpa [#allocation4], 0 }
   0x6   :  { %18 = vsyncpa [#allocation6], 0 }
   0x7   :  { %19 = vsyncpa [#allocation3], 0 }
   0x8   :  { %21 = vsyncpa [#allocation3 + $0x1], 0 }
   0x9   :  { %22 = vsyncpa [#allocation9], 0 }
   0xa   :  { %24 = vsyncpa [#allocation9 + $0x1], 0  ;;  %s1845_s17 = smov 0   ;;  %s1847_s18 = smov 0  }
   0xb   :  { %s1849_s19 = smov 0   ;;  %s1851_s20 = smov 0  }
   0xc LB: > { %s1866_s21 = sadd.s32 4294967295, %s1776_s20   ;;  %s2224_s22 = sadd.s32 4294967294, %s1776_s20   ;;  %s1776_s20 = sphi %s1851_s20, %s2252_s20   ;;  %s1772_s19 = sphi %s1849_s19, %s2251_s19   ;;  %s1768_s18 = sphi %s1847_s18, %s2250_s18   ;;  %s1764_s17 = sphi %s1845_s17, %s2249_s17  }
   0xd   : > { %s1870_s23 = sadd.s32 1, %s1776_s20   ;;  %s241_s24 = sadd.s32 1, %s1772_s19 }
   0xe   : > { %s238_s25 = ssub.s32 %s1776_s20, %s1870_s23  ;;  %p251_p0 = scmp.ne.s32.totalorder %s1772_s19, %s1768_s18 }
   0xf   : > { %p239_p1 = scmp.eq.s32.totalorder %s238_s25, 0  ;;  %p252_p2 = scmp.eq.s32.totalorder %s1866_s21, 1 }
  0x10   : > { %p257_p3 = scmp.ne.s32.totalorder %s1768_s18, %s1764_s17  ;;  %p258_p4 = scmp.eq.s32.totalorder %s2224_s22, 1 }
  0x11   : > { %s1883_s26 = scalar_select %p239_p1, %s1772_s19, %s241_s24  }
  0x12   : > { %p1885_p5 = por %p252_p2, %p251_p0  ;;  %p1889_p6 = por %p258_p4, %p257_p3 }
  0x13   : > { %p1465_p7 = scmp.ge.s32.totalorder %s1776_s20, 1  ;;  %p317_p8 = scmp.lt.s32.totalorder %s1776_s20, 3 }
  0x14   : > { %s2231_s27 = scalar_select %p1885_p5, 1, 0 }
  0x15   : > { %s2232_s28 = scalar_select %p1889_p6, 1, 0 }
  0x16   : > { %p2221_p9 = scmp.eq.s32.totalorder %s1866_s21, 0  ;;  %p1896_p10 = pnand %p1465_p7, %p317_p8 }
  0x17   : > { %s2234_s0 = sld [smem:[#allocation15_spill]] }
  0x18   : > { %s2233_s29 = scalar_select %p1896_p10, 1, 0 }
  0x19   : > { %p1556_p11 = pneg %p1896_p10  ;;  %s2235_s1 = sld [smem:[#allocation16_spill]] }
  0x1b   : > { %p1910_p12 = pnand %p2221_p9, %p1556_p11 }
  0x1d   : > { %s330_s13 = sshll.u32 %s2234_s0, 4  ;;  %p1624_p0 = pneg %p1910_p12  ;;  %s331_s13 = int_to_ptr.vmem [resolvable:$true] %s330_s13 }
  0x1e   : > { %s1622_s25 = scalar_lea.vmem %s331_s13, 16  ;;  %p1630_p3 = scmp.lt.s32.totalorder %s331_s13, %s331_s13 }
  0x1f   : > { %s341_s16 = sshll.u32 %s2235_s1, 4  ;;  %p1623_p13 = scmp.ne.s32.totalorder %s331_s13, %s1622_s25  ;;  %s342_s16 = int_to_ptr.vmem [resolvable:$true] %s341_s16 }
  0x20   : > { %p1631_p4 = scmp.lt.s32.totalorder %s1622_s25, %s1622_s25 }
  0x21   : > { %p1625_p1 = pnand %p1624_p0, %p1623_p13 }
  0x22   : > { %p1632_p7 = por %p1631_p4, %p1630_p3 }
  0x23   : > { %p1626_p2 = pneg %p1625_p1 }
  0x25   : > { %p1633_p8 = pnand %p1632_p7, %p1626_p2 }
  0x27   : > { %1636 = shalt.err (!%p1633_p8)
}
  0x28   : > { %s1778_s30 = smov [#allocation2]   ;;  %s1637_s12 = scalar_lea.vmem %s342_s16, 16 }
  0x29   : > { %1559 = dma.vmem_to_smem (!%p1910_p12), %s331_s13, 16, %s1778_s30, [#allocation4]  }
  0x2a   : > { %p1638_p11 = scmp.ne.s32.totalorder %s342_s16, %s1637_s12  ;;  %p1645_p5 = scmp.lt.s32.totalorder %s342_s16, %s342_s16 }
  0x2b   : > { %p1646_p10 = scmp.lt.s32.totalorder %s1637_s12, %s1637_s12 }
  0x2c   : > { %p1640_p9 = pnand %p1638_p11, %p1624_p0 }
  0x2d   : > { %p1647_p13 = por %p1646_p10, %p1645_p5 }
  0x2e   : > { %p1641_p6 = pneg %p1640_p9 }
  0x30   : > { %p1648_p1 = pnand %p1647_p13, %p1641_p6 }
  0x32   : > { %1651 = shalt.err (!%p1648_p1)
}
  0x33   : > { %s1779_s14 = smov [#allocation5]   ;;  %p2237_p2 = scmp.ne.s32.totalorder %s2233_s29, 0 }
  0x34   : > { %1562 = dma.vmem_to_smem (!%p1910_p12), %s342_s16, 16, %s1779_s14, [#allocation6]  }
  0x35   : > { %390 = sbr.rel (%p2237_p2) target bundleno = 1509 (0x5e5), region = 56  ;;  %p2238_p3 = scmp.eq.s32.totalorder (!%p2237_p2), %s1866_s21, 0 }
  0x3a   : > { %1747 = dma.done.wait (%p2238_p3), [#allocation4], 16   ;;  %p2239_p4 = pmov %p2238_p3 }
  0x3b   : > { %p2240_p9 = pmov %p2238_p3 }
  0x3c   : > { %1749 = vsyncadd (%p2239_p4), [#allocation4], 4294967280 }
  0x3d   : > { %1751 = dma.done.wait (%p2240_p9), [#allocation6], 16   ;;  %p2241_p5 = pmov %p2238_p3 }
  0x3f   : > { %1753 = vsyncadd (%p2241_p5), [#allocation6], 4294967280 }
  0x40   : > { %400 = sfence }
  0x41   : > { %p455_p6 = scmp.lt.s32.totalorder %s1866_s21, 1  ;;  %s2242_s2 = sld [smem:[#allocation17_spill]]  ;;  %vm476_vm0 = vcmask 1043456   ;;  %v1780_v12 = vmov 0.0   ;;  %v1489_v13 = vld [vmem:[%s2215_s6 + $0x38] sm:$0xff]  ;;  %v1781_v14 = vmov 0  }
  0x42   : > { %s2243_s3 = sld [smem:[#allocation18_spill]]  ;;  %649 = vmatprep.mubr.f32.mxu1 %v1780_v12  ;;  %637 = vmatprep.mubr.f32.mxu0 %v1780_v12  ;;  %v1487_v15 = vld [vmem:[%s2215_s6 + $0x28] sm:$0xff]  ;;  %v1488_v16 = vld [vmem:[%s2215_s6 + $0x30] sm:$0xff]  ;;  %v1013_v17 = vld [vmem:[%s2215_s6 + $0x18] sm:$0xff]  ;;  %vm556_vm1 = vcmask 31744   ;;  %vm679_vm2 = vcmask 261120  }
  0x43   : > { %s1932_s13 = scalar_select %p455_p6, %s1866_s21, 1  ;;  %1614 = vset.pattern.permute.xlu1 %v1781_v14  ;;  %1615 = vset.pattern.permute.xlu0 %v1781_v14  ;;  %v1486_v18 = vld [vmem:[%s2215_s6 + $0x20] sm:$0xff]  ;;  %v1012_v19 = vld [vmem:[%s2215_s6 + $0x10] sm:$0xff]  ;;  %v1506_v20 = vld [vmem:[%s2215_s6 + $0x58] sm:$0xff] }
  0x44   : > { %551 = vperm.xlu1 %1614, %v1489_v13   ;;  %v1011_v21 = vld [vmem:[%s2215_s6 + $0x8] sm:$0xff]  ;;  %v1505_v22 = vld [vmem:[%s2215_s6 + $0x50] sm:$0xff]  ;;  %v1010_v23 = vld [vmem:[%s2215_s6] sm:$0xff]  ;;  %s513_s14 = sld [smem:[#allocation2 + %s1866_s21]]  ;;  %p2244_p12 = scmp.ne.s32.totalorder %s2231_s27, 0 }
  0x45   : > { %s1534_s29 = sshll.u32 %s1932_s13, 3  ;;  %v1504_v24 = vld [vmem:[%s2215_s6 + $0x48] sm:$0xff]  ;;  %v1497_v25 = vld [vmem:[%s2217_s8 + $0x4] sm:$0xf]  ;;  %s1536_s0 = sshll.u32 %s1932_s13, 4  ;;  %v1484_v61 = vld [vmem:[%s2214_s5 + $0x30] sm:$0xff] }
  0x46   : > { %v1503_v26 = vld [vmem:[%s2215_s6 + $0x40] sm:$0xff]  ;;  %v1514_v27 = vld [vmem:[%s2217_s8 + $0x8] sm:$0xf]  ;;  %s469_s16 = scalar_lea.vmem %s2213_s4, %s1536_s0  ;;  %v1485_v63 = vld [vmem:[%s2214_s5 + $0x38] sm:$0xff]  ;;  %s2225_s0 = sand.u32 1, %s1768_s18  }
  0x47   : > { %s459_s24 = scalar_lea.vmem %s2242_s2, %s1534_s29  ;;  %v516_v54 = vld [vmem:[%s469_s16] sm:$0xff]  ;;  %v1481_v55 = vld [vmem:[%s469_s16 + $0x8] sm:$0xff]  ;;  %s2074_s22 = sshll.u32 %s2225_s0, 3 }
  0x48   : > { %s464_s12 = scalar_lea.vmem %s2243_s3, %s1534_s29  ;;  %v1941_v0 = vld [vmem:[%s459_s24] sm:$0xff]  ;;  %546 = vperm.xlu1 %1614, %v1488_v16   ;;  %s518_s29 = sld [smem:[#allocation5 + %s1866_s21]] }
  0x49   : > { %v1943_v1 = vld [vmem:[%s464_s12] sm:$0xff]  ;;  %v472_v2 = vmul.f32 %v1941_v0, %v1941_v0  ;;  %s447_s15 = scalar_lea.vmem [#allocation8], %s2074_s22  ;;  %s2226_s24 = scalar_lea.vmem [#allocation10], %s2074_s22 }
  0x4a   : > { %v492_v3 = vmul.f32 %v1943_v1, %v1943_v1  ;;  %v514_v51 = vstv %s513_s14  ;;  %v1482_v62 = vld [vmem:[%s2214_s5 + $0x20] sm:$0xff]  ;;  %s1250_s16 = sand.u32 1, %s1866_s21   ;;  %s2129_s13 = sshll.u32 %s1866_s21, 7 }
  0x4b   : > { %v474_v4 = vcombine.high %v472_v2, %v472_v2  ;;  %v477_v5 = vsel %vm476_vm0, %v472_v2, 0.0  ;;  %s1282_s12 = scalar_lea.hbm %s2219_s10, %s2129_s13  ;;  %s1284_s0 = sshll.u32 %s447_s15, 4  ;;  %s1285_s0 = int_to_ptr.vmem [resolvable:$true] %s1284_s0 }
  0x4c   : > { %v494_v6 = vcombine.high %v492_v3, %v492_v3  ;;  %v496_v8 = vsel %vm476_vm0, %v492_v3, 0.0  ;;  %536 = vperm.xlu1 %1614, %v1486_v18   ;;  %s1652_s1 = scalar_lea.vmem %s1285_s0, 128  ;;  %s1782_s14 = smov [#allocation8]  }
  0x4d   : > { %v478_v7 = vsel %vm476_vm0, %v474_v4, 0.0  ;;  %p1653_p10 = scmp.ne.s32.totalorder %s1285_s0, %s1652_s1 }
  0x4e   : > { %v497_v9 = vsel %vm476_vm0, %v494_v6, 0.0  ;;  %v479_v10 = vadd.f32 %v478_v7, %v477_v5  ;;  %v519_v52 = vstv %s518_s29  ;;  %s1656_s29 = sshll.u32 %s1782_s14, 4  ;;  %s1657_s29 = int_to_ptr.vmem [resolvable:$false] %s1656_s29 }
  0x4f   : > { %v498_v11 = vadd.f32 %v497_v9, %v496_v8  ;;  %p1654_p0 = pnand %p1653_p10, %p2244_p12  ;;  %s1658_s21 = scalar_lea.vmem %s1657_s29, 256 }
  0x50   : > { %480 = vadd.xlane.f32.xlu0 %v479_v10  ;;  %781 = vperm.xlu1 %1614, %v1506_v20   ;;  %p1659_p8 = scmp.lt.s32.totalorder %s1285_s0, %s1657_s29  ;;  %p1660_p11 = scmp.lt.s32.totalorder %s1658_s21, %s1652_s1 }
  0x51   : > { %p1655_p7 = pneg %p1654_p0 }
  0x52   : > { %p1661_p13 = por %p1660_p11, %p1659_p8 }
  0x54   : > { %499 = vadd.xlane.f32.xlu0 %v498_v11  ;;  %776 = vperm.xlu1 %1614, %v1505_v22   ;;  %p1662_p1 = pnand %p1661_p13, %p1655_p7 }
  0x58   : > { %771 = vperm.xlu1 %1614, %v1504_v24  }
  0x5c   : > { %766 = vperm.xlu1 %1614, %v1503_v26  }
  0x60   : > { %905 = vperm.xlu1 %1614, %v1514_v27  }
  0x6a   : > { %541 = vperm.xlu0 %1615, %v1487_v15  }
  0x6e   : > { %1031 = vperm.xlu0 %1615, %v1013_v17  }
  0x72   : > { %1026 = vperm.xlu0 %1615, %v1012_v19  }
  0x76   : > { %1021 = vperm.xlu0 %1615, %v1011_v21  }
  0x7a   : > { %1016 = vperm.xlu0 %1615, %v1010_v23  }
  0x7e   : > { %676 = vperm.xlu0 %1615, %v1497_v25  }
  0xd9   : > { %v481_v28 = vpop.xlane.xlu0 %480 }
  0xda   : > { %v482_v29 = vsel %vm476_vm0, %v481_v28, 0.0 }
  0xdb   : > { %v483_v30 = vrot.slane %v482_v29, 4 }
  0xdd   : > { %v484_v31 = vadd.f32 %v483_v30, %v482_v29  ;;  %v500_v32 = vpop.xlane.xlu0 %499  ;;  %v1496_v30 = vld [vmem:[%s2216_s7 + $0x4] sm:$0xf] }
  0xde   : > { %v501_v33 = vsel %vm476_vm0, %v500_v32, 0.0  ;;  %v1499_v32 = vld [vmem:[%s2214_s5 + $0x40] sm:$0xff] }
  0xdf   : > { %v485_v34 = vrot.slane %v484_v31, 2  ;;  %v502_v35 = vrot.slane %v501_v33, 4 }
  0xe1   : > { %v486_v36 = vadd.f32 %v485_v34, %v484_v31  ;;  %v503_v37 = vadd.f32 %v502_v35, %v501_v33  ;;  %v1500_v33 = vld [vmem:[%s2214_s5 + $0x48] sm:$0xff]  ;;  %v1501_v34 = vld [vmem:[%s2214_s5 + $0x50] sm:$0xff]  ;;  %v1502_v35 = vld [vmem:[%s2214_s5 + $0x58] sm:$0xff] }
  0xe3   : > { %v487_v38 = vrot.slane %v486_v36, 1  ;;  %v504_v39 = vrot.slane %v503_v37, 2 }
  0xe5   : > { %v488_v40 = vadd.f32 %v487_v38, %v486_v36  ;;  %v505_v41 = vadd.f32 %v504_v39, %v503_v37  ;;  %v542_v15 = vpop.permute.xlu0 %541 }
  0xe7   : > { %v489_v42 = vmul.f32 0.0009765625, %v488_v40  ;;  %v506_v43 = vrot.slane %v505_v41, 1 }
  0xe9   : > { %v507_v44 = vadd.f32 %v506_v43, %v505_v41  ;;  %1616 = vrsqrt.f32 %v489_v42  ;;  %v2063_v36 = vpop.permute.xlu0 %1031 }
  0xeb   : > { %v508_v45 = vmul.f32 0.0009765625, %v507_v44 }
  0xed   : > { %1618 = vrsqrt.f32 %v508_v45  ;;  %v2065_v37 = vpop.permute.xlu0 %1026 }
  0xf1   : > { %v2067_v38 = vpop.permute.xlu0 %1021 }
  0xf5   : > { %v2069_v39 = vpop.permute.xlu0 %1016 }
  0xf6   : > { %v1617_v46 = vpop.eup %1616 }
  0xf7   : > { %v491_v48 = vmul.f32 %v1617_v46, %v1941_v0  ;;  %v1483_v0 = vld [vmem:[%s2214_s5 + $0x28] sm:$0xff] }
  0xf9   : > { %v677_v41 = vpop.permute.xlu0 %676 }
  0xfa   : > { %v1619_v47 = vpop.eup %1618 }
  0xfb   : > { %v510_v49 = vmul.f32 %v1619_v47, %v1943_v1  ;;  %v552_v1 = vpop.permute.xlu1 %551 }
  0xfd   : > { %v511_v50 = vadd.f32 %v510_v49, %v491_v48 }
  0xff   : > { %v512_v53 = vmul.f32 0.70710677, %v511_v50  ;;  %v547_v6 = vpop.permute.xlu1 %546 }
 0x101   : > { %v515_v56 = vmul.f32 %v514_v51, %v512_v53  ;;  %v520_v57 = vmul.f32 %v519_v52, %v512_v53 }
 0x103   : > { %v2007_v58 = vadd.f32 %v516_v54, %v515_v56  ;;  %v523_v59 = vadd.f32 %v1481_v55, %v520_v57  ;;  %v537_v19 = vpop.permute.xlu1 %536 }
 0x105   : > { %v555_v60 = vcombine.high %v523_v59, %v523_v59  ;;  %v785_v31 = vcombine.high %v2007_v58, %v2007_v58 }
 0x107   : > { %1490 = vmatprep.subr.msk.mxu0 %vm476_vm0, %v555_v60  ;;  %1540 = vmatprep.subr.msk.mxu1 %vm476_vm0, %v555_v60  ;;  %v782_v45 = vpop.permute.xlu1 %781 }
 0x108   : > { %1491 = vmatpush1.msk.msra.mxu0 %vm476_vm0, %v523_v59  ;;  %1541 = vmatpush1.msk.msra.mxu1 %vm476_vm0, %v523_v59 }
 0x109   : > { %1494 = vmatmul.mubr.msk.f32.vlgmr.msra.gmra.mxu1 %vm556_vm1, %v1484_v61  ;;  %1492 = vmatmul.mubr.msk.f32.vlgmr.msra.gmra.mxu0 %vm556_vm1, %v1482_v62 }
 0x10a   : > { %655 = vmatprep.mubr.f32.mxu1 %v1780_v12  ;;  %643 = vmatprep.mubr.f32.mxu0 %v1780_v12 }
 0x10b   : > { %v777_v50 = vpop.permute.xlu1 %776 }
 0x10d   : > { %1495 = vmatmul.mubr.msk.f32.gmra.mxu1 %vm556_vm1, %v1485_v63  ;;  %1493 = vmatmul.mubr.msk.f32.gmra.mxu0 %vm556_vm1, %v1483_v0 }
 0x10e   : > { %747 = vmatprep.mubr.f32.mxu1 %v1780_v12  ;;  %975 = vmatprep.mubr.f32.mxu0 %v1780_v12 }
 0x10f   : > { %v772_v54 = vpop.permute.xlu1 %771 }
 0x113   : > { %v767_v0 = vpop.permute.xlu1 %766 }
 0x1c9   : > { %v651_v2 = vpop.f32.mrf.mxu1  ;;  %v639_v3 = vpop.f32.mrf.mxu0 }
 0x1ca   : > { %v652_v16 = vadd.f32 %v651_v2, %v547_v6  ;;  %v640_v25 = vadd.f32 %v639_v3, %v537_v19 }
 0x1cb   : > { %v653_v4 = vpop.f32.mrf.mxu1  ;;  %v641_v5 = vpop.f32.mrf.mxu0 }
 0x1cc   : > { %v654_v13 = vadd.f32 %v653_v4, %v547_v6  ;;  %v642_v23 = vadd.f32 %v641_v5, %v537_v19  ;;  %v666_v24 = vmax.f32 %v652_v16, 0.0  ;;  %v662_v29 = vmax.f32 %v640_v25, 0.0 }
 0x1cd   : > { %v657_v7 = vpop.f32.mrf.mxu1  ;;  %v645_v8 = vpop.f32.mrf.mxu0 }
 0x1ce   : > { %v658_v9 = vadd.f32 %v657_v7, %v552_v1  ;;  %v646_v21 = vadd.f32 %v645_v8, %v542_v15  ;;  %v667_v22 = vmax.f32 %v654_v13, 0.0  ;;  %v663_v28 = vmax.f32 %v642_v23, 0.0  ;;  %v906_v13 = vpop.permute.xlu1 %905 }
 0x1cf   : > { %v659_v10 = vpop.f32.mrf.mxu1  ;;  %v647_v11 = vpop.f32.mrf.mxu0 }
 0x1d0   : > { %v660_v14 = vadd.f32 %v659_v10, %v552_v1  ;;  %v648_v18 = vadd.f32 %v647_v11, %v542_v15  ;;  %v668_v20 = vmax.f32 %v658_v9, 0.0  ;;  %v664_v27 = vmax.f32 %v646_v21, 0.0  ;;  %v1513_v11 = vld [vmem:[%s2216_s7 + $0x8] sm:$0xf] }
 0x1d2   : > { %v669_v17 = vmax.f32 %v660_v14, 0.0  ;;  %v665_v26 = vmax.f32 %v648_v18, 0.0 }
 0x1d4   : > { %707 = vmatprep.subr.mxu1 %v669_v17 }
 0x1d5   : > { %708 = vmatpush1.msra.mxu1 %v668_v20 }
 0x1d6   : > { %709 = vmatprep.subr.mxu1 %v667_v22 }
 0x1d7   : > { %710 = vmatpush1.msra.mxu1 %v666_v24  ;;  %v1150_v24 = vld [vmem:[%s2217_s8] sm:$0xf] }
 0x1d8   : > { %711 = vmatprep.subr.mxu1 %v665_v26 }
 0x1d9   : > { %712 = vmatpush1.msra.mxu1 %v664_v27 }
 0x1da   : > { %713 = vmatprep.subr.mxu1 %v663_v28 }
 0x1db   : > { %714 = vmatpush1.msra.mxu1 %v662_v29 }
 0x1dc   : > { %1498 = vmatmul.mubr.msk.f32.vlgmr.msra.gmra.mxu1 %vm679_vm2, %v1496_v30  ;;  %1507 = vmatprep.subr.msk.mxu1 %vm476_vm0, %v785_v31 }
 0x1dd   : > { %1508 = vmatpush1.msk.msra.mxu1 %vm476_vm0, %v2007_v58  ;;  %866 = vmatprep.mubr.f32.mxu1 %v1780_v12 }
 0x1e0   : > { %1509 = vmatmul.mubr.msk.f32.vlgmr.msra.gmra.mxu1 %vm556_vm1, %v1499_v32 }
 0x1e1   : > { %872 = vmatprep.mubr.f32.mxu1 %v1780_v12 }
 0x1e4   : > { %1510 = vmatmul.mubr.msk.f32.gmra.mxu1 %vm556_vm1, %v1500_v33 }
 0x1e5   : > { %878 = vmatprep.mubr.f32.mxu1 %v1780_v12 }
 0x1e8   : > { %1511 = vmatmul.mubr.msk.f32.gmra.mxu1 %vm556_vm1, %v1501_v34 }
 0x1e9   : > { %884 = vmatprep.mubr.f32.mxu1 %v1780_v12 }
 0x1ec   : > { %1512 = vmatmul.mubr.msk.f32.gmra.mxu1 %vm556_vm1, %v1502_v35 }
 0x1ed   : > { %1223 = vmatprep.mubr.f32.mxu1 %v1780_v12 }
 0x29c   : > { %v749_v40 = vpop.f32.mrf.mxu1 }
 0x29d   : > { %v750_v43 = vadd.f32 %v749_v40, %v677_v41 }
 0x29e   : > { %v751_v42 = vpop.f32.mrf.mxu1 }
 0x29f   : > { %v752_v44 = vadd.f32 %v751_v42, %v677_v41  ;;  %v982_v41 = vmul.f32 1.4142135, %v2007_v58  ;;  %v1008_v58 = vld [vmem:[%s2214_s5 + $0x10] sm:$0xff] }
 0x2a0   : > { %v868_v46 = vpop.f32.mrf.mxu1 }
 0x2a1   : > { %v1237_v47 = vcombine.low %v750_v43, %v752_v44  ;;  %v869_v5 = vadd.f32 %v868_v46, %v767_v0  ;;  %v1007_v46 = vld [vmem:[%s2214_s5 + $0x8] sm:$0xff] }
 0x2a2   : > { %v870_v48 = vpop.f32.mrf.mxu1 }
 0x2a3   : > { %1239 = vst [vmem:[%s447_s15] sm:$0xff] %v1237_v47  ;;  %v871_v3 = vadd.f32 %v870_v48, %v767_v0  ;;  %v891_v10 = vmax.f32 %v869_v5, 0.0  ;;  %v1009_v47 = vld [vmem:[%s2214_s5 + $0x18] sm:$0xff]  ;;  %v1149_v5 = vld [vmem:[%s2216_s7] sm:$0xf] }
 0x2a4   : > { %v874_v49 = vpop.f32.mrf.mxu1 }
 0x2a5   : > { %v875_v1 = vadd.f32 %v874_v49, %v772_v54  ;;  %v892_v9 = vmax.f32 %v871_v3, 0.0 }
 0x2a6   : > { %v876_v51 = vpop.f32.mrf.mxu1 }
 0x2a7   : > { %v877_v62 = vadd.f32 %v876_v51, %v772_v54  ;;  %v893_v8 = vmax.f32 %v875_v1, 0.0 }
 0x2a8   : > { %v880_v52 = vpop.f32.mrf.mxu1 }
 0x2a9   : > { %v881_v61 = vadd.f32 %v880_v52, %v777_v50  ;;  %v894_v7 = vmax.f32 %v877_v62, 0.0 }
 0x2aa   : > { %v882_v53 = vpop.f32.mrf.mxu1 }
 0x2ab   : > { %v883_v59 = vadd.f32 %v882_v53, %v777_v50  ;;  %v895_v6 = vmax.f32 %v881_v61, 0.0 }
 0x2ac   : > { %v886_v55 = vpop.f32.mrf.mxu1 }
 0x2ad   : > { %v887_v56 = vadd.f32 %v886_v55, %v782_v45  ;;  %v896_v4 = vmax.f32 %v883_v59, 0.0 }
 0x2ae   : > { %v888_v57 = vpop.f32.mrf.mxu1 }
 0x2af   : > { %v889_v60 = vadd.f32 %v888_v57, %v782_v45  ;;  %v897_v2 = vmax.f32 %v887_v56, 0.0  ;;  %v1006_v45 = vld [vmem:[%s2214_s5] sm:$0xff] }
 0x2b1   : > { %v898_v63 = vmax.f32 %v889_v60, 0.0 }
 0x2b3   : > { %935 = vmatprep.subr.mxu0 %v898_v63 }
 0x2b4   : > { %936 = vmatpush1.msra.mxu0 %v897_v2 }
 0x2b5   : > { %937 = vmatprep.subr.mxu0 %v896_v4 }
 0x2b6   : > { %938 = vmatpush1.msra.mxu0 %v895_v6 }
 0x2b7   : > { %939 = vmatprep.subr.mxu0 %v894_v7 }
 0x2b8   : > { %940 = vmatpush1.msra.mxu0 %v893_v8 }
 0x2b9   : > { %941 = vmatprep.subr.mxu0 %v892_v9 }
 0x2ba   : > { %942 = vmatpush1.msra.mxu0 %v891_v10 }
 0x2bb   : > { %1515 = vmatmul.mubr.msk.f32.vlgmr.msra.gmra.mxu0 %vm679_vm2, %v1513_v11 }
 0x2bc   : > { %1116 = vmatprep.mubr.f32.mxu0 %v1780_v12 }
 0x37b   : > { %v977_v14 = vpop.f32.mrf.mxu0 }
 0x37c   : > { %v978_v15 = vadd.f32 %v977_v14, %v906_v13 }
 0x37d   : > { %v979_v16 = vpop.f32.mrf.mxu0 }
 0x37e   : > { %v980_v17 = vadd.f32 %v979_v16, %v906_v13  ;;  %v983_v18 = vmul.f32 %v978_v15, %v978_v15 }
 0x380   : > { %v1242_v19 = vcombine.low %v978_v15, %v980_v17  ;;  %v984_v20 = vmul.f32 %v980_v17, %v980_v17  ;;  %v985_v21 = vsel %vm476_vm0, %v983_v18, 0.0 }
 0x382   : > { %v986_v22 = vsel %vm476_vm0, %v984_v20, 0.0  ;;  %1244 = vst [vmem:[%s2226_s24] sm:$0xff] %v1242_v19  ;;  %s2137_s24 = scalar_lea.sflag [#allocation9], %s1250_s16 }
 0x383   : > { %v987_v23 = vadd.f32 %v986_v22, %v985_v21 }
 0x385   : > { %988 = vadd.xlane.f32.xlu1 %v987_v23 }
 0x396   : > { %1153 = vperm.xlu1 %1614, %v1150_v24  }
 0x40e   : > { %v989_v25 = vpop.xlane.xlu1 %988 }
 0x40f   : > { %v990_v26 = vsel %vm476_vm0, %v989_v25, 0.0 }
 0x410   : > { %v991_v27 = vrot.slane %v990_v26, 4 }
 0x412   : > { %v992_v28 = vadd.f32 %v991_v27, %v990_v26 }
 0x414   : > { %v993_v29 = vrot.slane %v992_v28, 2 }
 0x416   : > { %v994_v30 = vadd.f32 %v993_v29, %v992_v28 }
 0x418   : > { %v995_v31 = vrot.slane %v994_v30, 1 }
 0x41a   : > { %v996_v32 = vadd.f32 %v995_v31, %v994_v30 }
 0x41c   : > { %v997_v33 = vmul.f32 0.0009765625, %v996_v32 }
 0x41e   : > { %1620 = vrsqrt.f32 %v997_v33 }
 0x42b   : > { %v1621_v34 = vpop.eup %1620 }
 0x42c   : > { %v999_v35 = vmul.f32 %v1621_v34, %v978_v15  ;;  %v1000_v40 = vmul.f32 %v1621_v34, %v980_v17 }
 0x42e   : > { %v1003_v42 = vcombine.low %v999_v35, %v1000_v40 }
 0x430   : > { %v1005_v43 = vsub.f32 %v982_v41, %v1003_v42 }
 0x432   : > { %v1035_v44 = vcombine.high %v1005_v43, %v1005_v43 }
 0x434   : > { %1516 = vmatprep.subr.msk.mxu0 %vm476_vm0, %v1035_v44 }
 0x435   : > { %1517 = vmatpush1.msk.msra.mxu0 %vm476_vm0, %v1005_v43 }
 0x436   : > { %1518 = vmatmul.mubr.msk.f32.vlgmr.msra.gmra.mxu0 %vm556_vm1, %v1006_v45 }
 0x437   : > { %1122 = vmatprep.mubr.f32.mxu0 %v1780_v12 }
 0x43a   : > { %1519 = vmatmul.mubr.msk.f32.gmra.mxu0 %vm556_vm1, %v1007_v46 }
 0x43b   : > { %1128 = vmatprep.mubr.f32.mxu0 %v1780_v12 }
 0x43e   : > { %1520 = vmatmul.mubr.msk.f32.gmra.mxu0 %vm556_vm1, %v1008_v58 }
 0x43f   : > { %1134 = vmatprep.mubr.f32.mxu0 %v1780_v12 }
 0x442   : > { %1521 = vmatmul.mubr.msk.f32.gmra.mxu0 %vm556_vm1, %v1009_v47 }
 0x4f6   : > { %v1118_v48 = vpop.f32.mrf.mxu0 }
 0x4f7   : > { %v1119_v2 = vadd.f32 %v1118_v48, %v2069_v39 }
 0x4f8   : > { %v1120_v49 = vpop.f32.mrf.mxu0 }
 0x4f9   : > { %v1121_v0 = vadd.f32 %v1120_v49, %v2069_v39 }
 0x4fa   : > { %v1124_v50 = vpop.f32.mrf.mxu0 }
 0x4fb   : > { %v1125_v62 = vadd.f32 %v1124_v50, %v2067_v38  ;;  %v1142_v4 = vmax.f32 %v1121_v0, 0.0 }
 0x4fc   : > { %v1126_v51 = vpop.f32.mrf.mxu0 }
 0x4fd   : > { %v1127_v60 = vadd.f32 %v1126_v51, %v2067_v38  ;;  %v1141_v38 = vmax.f32 %v1119_v2, 0.0 }
 0x4fe   : > { %v1130_v52 = vpop.f32.mrf.mxu0 }
 0x4ff   : > { %v1131_v59 = vadd.f32 %v1130_v52, %v2065_v37 }
 0x500   : > { %v1132_v53 = vpop.f32.mrf.mxu0 }
 0x501   : > { %v1133_v57 = vadd.f32 %v1132_v53, %v2065_v37  ;;  %v1145_v3 = vmax.f32 %v1131_v59, 0.0  ;;  %v1143_v37 = vmax.f32 %v1125_v62, 0.0 }
 0x502   : > { %v1136_v54 = vpop.f32.mrf.mxu0 }
 0x503   : > { %v1137_v55 = vadd.f32 %v1136_v54, %v2063_v36  ;;  %v1146_v1 = vmax.f32 %v1133_v57, 0.0 }
 0x504   : > { %v1138_v56 = vpop.f32.mrf.mxu0 }
 0x505   : > { %v1139_v12 = vadd.f32 %v1138_v56, %v2063_v36  ;;  %v1147_v63 = vmax.f32 %v1137_v55, 0.0  ;;  %v1144_v36 = vmax.f32 %v1127_v60, 0.0 }
 0x507   : > { %v1148_v61 = vmax.f32 %v1139_v12, 0.0 }
 0x509   : > { %1183 = vmatprep.subr.mxu1 %v1148_v61 }
 0x50a   : > { %1184 = vmatpush1.msra.mxu1 %v1147_v63 }
 0x50b   : > { %1185 = vmatprep.subr.mxu1 %v1146_v1 }
 0x50c   : > { %1186 = vmatpush1.msra.mxu1 %v1145_v3 }
 0x50d   : > { %1187 = vmatprep.subr.mxu1 %v1144_v36 }
 0x50e   : > { %1188 = vmatpush1.msra.mxu1 %v1143_v37 }
 0x50f   : > { %1189 = vmatprep.subr.mxu1 %v1142_v4 }
 0x510   : > { %1190 = vmatpush1.msra.mxu1 %v1141_v38 }
 0x511   : > { %1522 = vmatmul.mubr.msk.f32.vlgmr.msra.gmra.mxu1 %vm679_vm2, %v1149_v5 }
 0x512   : > { %1665 = shalt.err (!%p1662_p1)
}
 0x513   : > { %s1666_s25 = scalar_lea.hbm %s1282_s12, 128  ;;  %s1670_s30 = scalar_lea.hbm %s2219_s10, 256 }
 0x514   : > { %p1667_p2 = scmp.ne.s32.totalorder %s1282_s12, %s1666_s25  ;;  %p1671_p9 = scmp.lt.s32.totalorder %s1282_s12, %s2219_s10 }
 0x515   : > { %p1672_p5 = scmp.lt.s32.totalorder %s1670_s30, %s1666_s25 }
 0x516   : > { %p1668_p3 = pnand %p1667_p2, %p2244_p12 }
 0x517   : > { %p1673_p6 = por %p1672_p5, %p1671_p9 }
 0x518   : > { %p1669_p4 = pneg %p1668_p3 }
 0x51a   : > { %p1674_p10 = pnand %p1673_p6, %p1669_p4 }
 0x51c   : > { %1677 = shalt.err (!%p1674_p10)
}
 0x51d   : > { %1551 = dma.vmem_to_hbm [thread:$0]  (%p2244_p12), %s1285_s0, 128, %s1282_s12, %s2137_s24  }
 0x51e   : > { %s1296_s29 = scalar_lea.hbm %s2220_s11, %s2129_s13  ;;  %s2245_s21 = scalar_lea.vmem [#allocation10], %s2074_s22 }
 0x51f   : > { %s1298_s15 = sshll.u32 %s2245_s21, 4  ;;  %s1783_s3 = smov [#allocation10]   ;;  %s1299_s15 = int_to_ptr.vmem [resolvable:$true] %s1298_s15 }
 0x520   : > { %s1678_s2 = scalar_lea.vmem %s1299_s15, 128  ;;  %s1682_s25 = sshll.u32 %s1783_s3, 4  ;;  %s1683_s25 = int_to_ptr.vmem [resolvable:$false] %s1682_s25 }
 0x521   : > { %p1679_p0 = scmp.ne.s32.totalorder %s1299_s15, %s1678_s2  ;;  %s1684_s16 = scalar_lea.vmem %s1683_s25, 256 }
 0x522   : > { %p1685_p11 = scmp.lt.s32.totalorder %s1299_s15, %s1683_s25  ;;  %p1686_p13 = scmp.lt.s32.totalorder %s1684_s16, %s1678_s2 }
 0x523   : > { %p1680_p7 = pnand %p1679_p0, %p2244_p12 }
 0x524   : > { %p1687_p1 = por %p1686_p13, %p1685_p11 }
 0x525   : > { %p1681_p8 = pneg %p1680_p7 }
 0x527   : > { %p1688_p2 = pnand %p1687_p1, %p1681_p8 }
 0x529   : > { %1691 = shalt.err (!%p1688_p2)
}
 0x52a   : > { %s1692_s0 = scalar_lea.hbm %s1296_s29, 128  ;;  %s1696_s1 = scalar_lea.hbm %s2220_s11, 256 }
 0x52b   : > { %p1693_p3 = scmp.ne.s32.totalorder %s1296_s29, %s1692_s0  ;;  %p1697_p5 = scmp.lt.s32.totalorder %s1296_s29, %s2220_s11 }
 0x52c   : > { %p1698_p6 = scmp.lt.s32.totalorder %s1696_s1, %s1692_s0 }
 0x52d   : > { %p1694_p4 = pnand %p1693_p3, %p2244_p12 }
 0x52e   : > { %p1699_p10 = por %p1698_p6, %p1697_p5 }
 0x52f   : > { %p1695_p9 = pneg %p1694_p4 }
 0x531   : > { %p1700_p0 = pnand %p1699_p10, %p1695_p9 }
 0x533   : > { %1703 = shalt.err (!%p1700_p0)
}
 0x534   : > { %1552 = dma.vmem_to_hbm [thread:$0]  (%p2244_p12), %s1299_s15, 128, %s1296_s29, %s2137_s24   ;;  %v1154_v6 = vpop.permute.xlu1 %1153 }
 0x535   : > { %s440_s2 = scalar_lea.vmem [#allocation7], %s2074_s22  ;;  %s1268_s0 = scalar_lea.hbm %s2218_s9, %s2129_s13 }
 0x536   : > { %s1270_s3 = sshll.u32 %s440_s2, 4  ;;  %s2246_s12 = sand.u32 1, %s1768_s18   ;;  %s1271_s3 = int_to_ptr.vmem [resolvable:$true] %s1270_s3 }
 0x537   : > { %s1246_s30 = scalar_lea.sflag [#allocation3], %s2246_s12  ;;  %s1704_s1 = scalar_lea.vmem %s1271_s3, 128 }
 0x538   : > { %p1705_p7 = scmp.ne.s32.totalorder %s1271_s3, %s1704_s1  ;;  %s1784_s24 = smov [#allocation7]  }
 0x539   : > { %s1708_s29 = sshll.u32 %s1784_s24, 4  ;;  %s1709_s29 = int_to_ptr.vmem [resolvable:$false] %s1708_s29 }
 0x53a   : > { %p1706_p8 = pnand %p1705_p7, %p2244_p12  ;;  %s1710_s22 = scalar_lea.vmem %s1709_s29, 256 }
 0x53b   : > { %p1711_p13 = scmp.lt.s32.totalorder %s1271_s3, %s1709_s29  ;;  %p1712_p1 = scmp.lt.s32.totalorder %s1710_s22, %s1704_s1 }
 0x53c   : > { %p1707_p11 = pneg %p1706_p8 }
 0x53d   : > { %p1713_p2 = por %p1712_p1, %p1711_p13 }
 0x53f   : > { %p1714_p3 = pnand %p1713_p2, %p1707_p11 }
 0x5d1   : > { %v1225_v39 = vpop.f32.mrf.mxu1 }
 0x5d2   : > { %v1226_v8 = vadd.f32 %v1225_v39, %v1154_v6 }
 0x5d3   : > { %v1227_v7 = vpop.f32.mrf.mxu1 }
 0x5d4   : > { %v1228_v9 = vadd.f32 %v1227_v7, %v1154_v6 }
 0x5d6   : > { %v1232_v10 = vcombine.low %v1226_v8, %v1228_v9 }
 0x5d8   : > { %1234 = vst [vmem:[%s440_s2] sm:$0xff] %v1232_v10 }
 0x5d9   : > { %1717 = shalt.err (!%p1714_p3)
}
 0x5da   : > { %s1718_s15 = scalar_lea.hbm %s1268_s0, 128  ;;  %s1722_s21 = scalar_lea.hbm %s2218_s9, 256 }
 0x5db   : > { %p1719_p4 = scmp.ne.s32.totalorder %s1268_s0, %s1718_s15  ;;  %p1723_p6 = scmp.lt.s32.totalorder %s1268_s0, %s2218_s9 }
 0x5dc   : > { %p1724_p10 = scmp.lt.s32.totalorder %s1722_s21, %s1718_s15 }
 0x5dd   : > { %p1720_p9 = pnand %p1719_p4, %p2244_p12 }
 0x5de   : > { %p1725_p0 = por %p1724_p10, %p1723_p6 }
 0x5df   : > { %p1721_p5 = pneg %p1720_p9 }
 0x5e1   : > { %p1726_p7 = pnand %p1725_p0, %p1721_p5 }
 0x5e3   : > { %1729 = shalt.err (!%p1726_p7)
}
 0x5e4   : > { %1550 = dma.vmem_to_hbm [thread:$0]  (%p2244_p12), %s1271_s3, 128, %s1268_s0, %s1246_s30  }
 0x5e5 PF: > { %p1577_p8 = scmp.ge.s32.totalorder %s1776_s20, 2  ;;  %s1310_s16 = sand.u32 1, %s1764_s17  }
 0x5e6   : > { %p2247_p11 = scmp.ne.s32.totalorder %s2232_s28, 0  ;;  %s1311_s12 = scalar_lea.sflag [#allocation3], %s1310_s16 }
 0x5e8   : > { %p1564_p13 = pnand %p1577_p8, %p2247_p11 }
 0x5ea   : > { %p1565_p1 = pneg %p1564_p13 }
 0x5ec   : > { %1755 = dma.done.wait (%p1565_p1), %s1311_s12, 128  }
 0x5ed   : > { %1757 = vsyncadd (%p1565_p1), %s1311_s12, 4294967168  ;;  %s2248_s1 = sadd.s32 4294967294, %s1776_s20  }
 0x5ee   : > { %s1319_s24 = sand.u32 1, %s2248_s1  }
 0x5ef   : > { %s1320_s29 = scalar_lea.sflag [#allocation9], %s1319_s24 }
 0x5f0   : > { %1759 = dma.done.wait (%p1565_p1), %s1320_s29, 256  }
 0x5f1   : > { %1761 = vsyncadd (%p1565_p1), %s1320_s29, 4294967040  ;;  %p27_p12 = scmp.ge.s32.totalorder %s1870_s23, 4   ;;  %s2249_s17 = smov %s1768_s18 }
 0x5f2   : > { %s2250_s18 = smov %s1772_s19  ;;  %s2251_s19 = smov %s1883_s26 }
 0x5f3   : > { %s2252_s20 = smov %s1870_s23  ;;  %29 = sbr.rel (!%p27_p12) target bundleno = 12 (0xc), region = 147 }
 0x5f8   :  { %1334 = vsyncpa [#allocation3], 1 }
 0x5f9   :  { %1336 = vsyncpa [#allocation3 + $0x1], 1 }
 0x5fa   :  { %1337 = vsyncpa [#allocation9], 1 }
 0x5fb   :  { %1339 = vsyncpa [#allocation9 + $0x1], 1 }
 0x5fc   :  { %1340 = vsyncpa [#allocation4], 1 }
 0x5fd   :  { %1342 = vsyncpa [#allocation4 + $0x1], 1 }
 0x5fe   :  { %1343 = vsyncpa [#allocation6], 1 }

</bundles_post_ra>
